<compile_context>
chip_gen: v5e
topology: v5e:2x2
jax: 0.10.0
libtpu: 0.0.40
codegen_flags: <defaults>
</compile_context>

<pallas_src>
import functools

import jax
import jax.numpy as jnp
from jax.experimental import pallas as pl
from jax.experimental.pallas import tpu as pltpu


def _policy_kernel(h1_ref, ent_ref, we_ref, be_ref, wlt_ref, wlh_ref, bl_ref,
                   out_ref):
    # ent: (TM, 1) f32; we/be/wlt/wlh: (1, H) f32; bl: (1, 1) f32 in SMEM.
    ent = ent_ref[...]                                              # (TM, 1)
    # Linear(1 -> H): entropy @ W^T + b  ==  ent * we + be  (pure VPU broadcast)
    target = ent * we_ref[...] + be_ref[...]                        # (TM, H)
    # LeakyReLU(0.1)
    target = jnp.where(target >= 0, target, jnp.float32(0.1) * target)
    # Linear(2H -> 1) on concat([target, h1], -1):
    #   logit = target @ wl[:H] + h1 @ wl[H:] + b
    # computed as fused VPU multiply-add + one lane reduction (no MXU).
    h1 = h1_ref[...].astype(jnp.float32)                            # (TM, H)
    contrib = target * wlt_ref[...] + h1 * wlh_ref[...]             # (TM, H)
    logit = jnp.sum(contrib, axis=-1, keepdims=True) + bl_ref[0, 0]  # (TM, 1)
    # exact sigmoid (matches reference within f32)
    out_ref[...] = 1.0 / (1.0 + jnp.exp(-logit))


def _round_up(x, m):
    return ((x + m - 1) // m) * m


@functools.partial(jax.jit, static_argnames=("block_rows",))
def attn_global_policy_v4(h1, entropy, params, *, block_rows=None):
    """h1: (B, H) f32, entropy: (B,) f32 -> prob: (B,) f32."""
    B, H = h1.shape

    # --- pick a batch tile size from the VMEM budget ----------------------
    if block_rows is None:
        # keep double-buffered h1 (2 * TM * H * 4B) under ~8 MiB: safe on
        # v5e (16 MiB default scoped VMEM) and v6e / v7x (32 MiB default).
        budget_bytes = 8 * 1024 * 1024
        tm = max(8, min(1024, budget_bytes // (2 * H * 4)))
        tm = (tm // 8) * 8
    else:
        tm = block_rows
    # never tile wider than the (8-aligned) batch itself
    tm = min(tm, _round_up(B, 8))

    # --- pad batch to a multiple of the tile (unmasked vld / vst) ---------
    Bp = _round_up(B, tm)
    pad = Bp - B
    h1_in = h1.astype(jnp.float32)
    ent = entropy.reshape(B, 1).astype(jnp.float32)
    if pad:
        h1_in = jnp.pad(h1_in, ((0, pad), (0, 0)))
        ent = jnp.pad(ent, ((0, pad), (0, 0)))

    # --- parameters, pre-transposed / split in the wrapper -----------------
    we = params["linear_entropy_w"].reshape(1, H).astype(jnp.float32)   # W^T of (H,1)
    be = params["linear_entropy_b"].reshape(1, H).astype(jnp.float32)
    wl = params["linear_last_w"].reshape(1, 2 * H).astype(jnp.float32)  # (1, 2H)
    wl_t = wl[:, :H]                                                    # acts on target
    wl_h = wl[:, H:]                                                    # acts on h1
    bl = params["linear_last_b"].reshape(1, 1).astype(jnp.float32)

    grid = (Bp // tm,)
    const2 = lambda shape: pl.BlockSpec(shape, lambda i: (0, 0))

    out = pl.pallas_call(
        _policy_kernel,
        out_shape=jax.ShapeDtypeStruct((Bp, 1), jnp.float32),
        grid=grid,
        in_specs=[
            pl.BlockSpec((tm, H), lambda i: (i, 0)),                  # h1 tile
            pl.BlockSpec((tm, 1), lambda i: (i, 0)),                  # entropy tile
            const2((1, H)),                                           # linear_entropy W^T
            const2((1, H)),                                           # linear_entropy b
            const2((1, H)),                                           # linear_last W (target half)
            const2((1, H)),                                           # linear_last W (h1 half)
            pl.BlockSpec(memory_space=pltpu.MemorySpace.SMEM),        # linear_last b (scalar)
        ],
        out_specs=pl.BlockSpec((tm, 1), lambda i: (i, 0)),
        compiler_params=pltpu.CompilerParams(
            dimension_semantics=("parallel",)),
    )(h1_in, ent, we, be, wl_t, wl_h, bl)

    return out[:B, 0]   # matches PyTorch .squeeze() for B > 1


def init_params(key, hidden_size):
    """Deterministic init matching the shapes declared in __init__."""
    k1, k2, k3, k4 = jax.random.split(key, 4)
    H = hidden_size
    # nn.Linear default: U(-1/sqrt(fan_in), 1/sqrt(fan_in))
    b1 = 1.0                      # fan_in = 1 for linear_entropy
    b2 = 1.0 / jnp.sqrt(2.0 * H)  # fan_in = 2H for linear_last
    return {
        "linear_entropy_w": jax.random.uniform(k1, (H, 1), jnp.float32, -b1, b1),
        "linear_entropy_b": jax.random.uniform(k2, (H,), jnp.float32, -b1, b1),
        "linear_last_w": jax.random.uniform(k3, (1, 2 * H), jnp.float32, -b2, b2),
        "linear_last_b": jax.random.uniform(k4, (1,), jnp.float32, -b2, b2),
    }


def _reference(h1, entropy, params):
    """Pure-JAX reference mirroring the PyTorch forward."""
    ent = entropy[:, None]                                            # (B, 1)
    target = ent @ params["linear_entropy_w"].T + params["linear_entropy_b"]
    target = jnp.where(target >= 0, target, 0.1 * target)
    cat = jnp.concatenate([target, h1], axis=-1)                      # (B, 2H)
    logit = (cat @ params["linear_last_w"].T + params["linear_last_b"])[:, 0]
    return jax.nn.sigmoid(logit)


if __name__ == "__main__":
    B, H = 2, 32
    key = jax.random.PRNGKey(0)
    kp, kh, ke = jax.random.split(key, 3)

    params = init_params(kp, H)
    h1 = jax.random.normal(kh, (B, H), jnp.float32)
    entropy = jax.random.normal(ke, (B,), jnp.float32)

    prob = attn_global_policy_v4(h1, entropy, params)
    prob = jax.block_until_ready(prob)

    ref = _reference(h1, entropy, params)
    assert prob.shape == (B,), prob.shape
    assert jnp.allclose(prob, ref, atol=1e-5, rtol=1e-5), (prob, ref)

    print("KERNEL_OK")
</pallas_src>

<mosaic_0001>
module attributes {stable_mosaic.version = 11 : i64} {
  func.func @_policy_kernel(%arg0: i32, %arg1: memref<8x32xf32, #tpu.memory_space<vmem>>, %arg2: memref<8x1xf32, #tpu.memory_space<vmem>>, %arg3: memref<1x32xf32, #tpu.memory_space<vmem>>, %arg4: memref<1x32xf32, #tpu.memory_space<vmem>>, %arg5: memref<1x32xf32, #tpu.memory_space<vmem>>, %arg6: memref<1x32xf32, #tpu.memory_space<vmem>>, %arg7: memref<1x1xf32, #tpu.memory_space<smem>>, %arg8: memref<8x1xf32, #tpu.memory_space<vmem>>) attributes {dimension_semantics = [#tpu.dimension_semantics<parallel>], iteration_bounds = array<i64: 1>, scalar_prefetch = 0 : i64, scratch_operands = 0 : i64, tpu.core_type = #tpu.core_type<tc>, window_params = [{transform_indices = @transform_0, window_bounds = array<i64: 8, 32>}, {transform_indices = @transform_1, window_bounds = array<i64: 8, 1>}, {pipeline_mode = #tpu.pipeline_mode<synchronous>, transform_indices = @transform_2, window_bounds = array<i64: 1, 32>}, {pipeline_mode = #tpu.pipeline_mode<synchronous>, transform_indices = @transform_3, window_bounds = array<i64: 1, 32>}, {pipeline_mode = #tpu.pipeline_mode<synchronous>, transform_indices = @transform_4, window_bounds = array<i64: 1, 32>}, {pipeline_mode = #tpu.pipeline_mode<synchronous>, transform_indices = @transform_5, window_bounds = array<i64: 1, 32>}, {transform_indices = @transform_6, window_bounds = array<i64: 1, 1>}, {transform_indices = @transform_7, window_bounds = array<i64: 8, 1>}]} {
    %c0 = arith.constant 0 : index
    %c0_0 = arith.constant 0 : index
    %0 = vector.load %arg2[%c0, %c0_0] : memref<8x1xf32, #tpu.memory_space<vmem>>, vector<8x1xf32>
    %c0_1 = arith.constant 0 : index
    %c0_2 = arith.constant 0 : index
    %1 = vector.load %arg3[%c0_1, %c0_2] : memref<1x32xf32, #tpu.memory_space<vmem>>, vector<1x32xf32>
    %2 = vector.broadcast %0 : vector<8x1xf32> to vector<8x32xf32>
    %3 = vector.broadcast %1 : vector<1x32xf32> to vector<8x32xf32>
    %4 = arith.mulf %2, %3 : vector<8x32xf32>
    %c0_3 = arith.constant 0 : index
    %c0_4 = arith.constant 0 : index
    %5 = vector.load %arg4[%c0_3, %c0_4] : memref<1x32xf32, #tpu.memory_space<vmem>>, vector<1x32xf32>
    %6 = vector.broadcast %5 : vector<1x32xf32> to vector<8x32xf32>
    %7 = arith.addf %4, %6 : vector<8x32xf32>
    %cst = arith.constant 0.000000e+00 : f32
    %8 = vector.broadcast %cst : f32 to vector<8x32xf32>
    %9 = arith.cmpf oge, %7, %8 : vector<8x32xf32>
    %cst_5 = arith.constant 1.000000e-01 : f32
    %10 = vector.broadcast %cst_5 : f32 to vector<8x32xf32>
    %11 = arith.mulf %10, %7 : vector<8x32xf32>
    %12 = arith.select %9, %7, %11 : vector<8x32xi1>, vector<8x32xf32>
    %c0_6 = arith.constant 0 : index
    %c0_7 = arith.constant 0 : index
    %13 = vector.load %arg1[%c0_6, %c0_7] : memref<8x32xf32, #tpu.memory_space<vmem>>, vector<8x32xf32>
    %c0_8 = arith.constant 0 : index
    %c0_9 = arith.constant 0 : index
    %14 = vector.load %arg5[%c0_8, %c0_9] : memref<1x32xf32, #tpu.memory_space<vmem>>, vector<1x32xf32>
    %15 = vector.broadcast %14 : vector<1x32xf32> to vector<8x32xf32>
    %16 = arith.mulf %12, %15 : vector<8x32xf32>
    %c0_10 = arith.constant 0 : index
    %c0_11 = arith.constant 0 : index
    %17 = vector.load %arg6[%c0_10, %c0_11] : memref<1x32xf32, #tpu.memory_space<vmem>>, vector<1x32xf32>
    %18 = vector.broadcast %17 : vector<1x32xf32> to vector<8x32xf32>
    %19 = arith.mulf %13, %18 : vector<8x32xf32>
    %20 = arith.addf %16, %19 : vector<8x32xf32>
    %cst_12 = arith.constant dense<0.000000e+00> : vector<8xf32>
    %21 = vector.multi_reduction <add>, %20, %cst_12 [1] : vector<8x32xf32> to vector<8xf32>
    %22 = vector.shape_cast %21 : vector<8xf32> to vector<8x1xf32>
    %c0_13 = arith.constant 0 : index
    %c0_14 = arith.constant 0 : index
    %23 = memref.load %arg7[%c0_13, %c0_14] : memref<1x1xf32, #tpu.memory_space<smem>>
    %24 = vector.broadcast %23 : f32 to vector<8x1xf32>
    %25 = arith.addf %22, %24 : vector<8x1xf32>
    %cst_15 = arith.constant 0.000000e+00 : f32
    %26 = vector.broadcast %cst_15 : f32 to vector<8x1xf32>
    %27 = arith.subf %26, %25 : vector<8x1xf32>
    %28 = math.exp %27 : vector<8x1xf32>
    %cst_16 = arith.constant 1.000000e+00 : f32
    %29 = vector.broadcast %cst_16 : f32 to vector<8x1xf32>
    %30 = arith.addf %29, %28 : vector<8x1xf32>
    %cst_17 = arith.constant 1.000000e+00 : f32
    %31 = vector.broadcast %cst_17 : f32 to vector<8x1xf32>
    %32 = arith.divf %31, %30 : vector<8x1xf32>
    %c0_18 = arith.constant 0 : index
    %c0_19 = arith.constant 0 : index
    %33 = vector.load %arg8[%c0_18, %c0_19] : memref<8x1xf32, #tpu.memory_space<vmem>>, vector<8x1xf32>
    tpu.vector_store %arg8[%c0_18, %c0_19], %32 {strides = array<i32>} : memref<8x1xf32, #tpu.memory_space<vmem>>, vector<8x1xf32>,
    return
  }
  func.func @transform_0(%arg0: i32) -> (i32, i32) {
    %c0_i32 = arith.constant 0 : i32
    %c0_i32_0 = arith.constant 0 : i32
    return %arg0, %c0_i32 : i32, i32
  }
  func.func @transform_1(%arg0: i32) -> (i32, i32) {
    %c0_i32 = arith.constant 0 : i32
    %c0_i32_0 = arith.constant 0 : i32
    return %arg0, %c0_i32 : i32, i32
  }
  func.func @transform_2(%arg0: i32) -> (i32, i32) {
    %c0_i32 = arith.constant 0 : i32
    %c0_i32_0 = arith.constant 0 : i32
    %c0_i32_1 = arith.constant 0 : i32
    return %c0_i32, %c0_i32_0 : i32, i32
  }
  func.func @transform_3(%arg0: i32) -> (i32, i32) {
    %c0_i32 = arith.constant 0 : i32
    %c0_i32_0 = arith.constant 0 : i32
    %c0_i32_1 = arith.constant 0 : i32
    return %c0_i32, %c0_i32_0 : i32, i32
  }
  func.func @transform_4(%arg0: i32) -> (i32, i32) {
    %c0_i32 = arith.constant 0 : i32
    %c0_i32_0 = arith.constant 0 : i32
    %c0_i32_1 = arith.constant 0 : i32
    return %c0_i32, %c0_i32_0 : i32, i32
  }
  func.func @transform_5(%arg0: i32) -> (i32, i32) {
    %c0_i32 = arith.constant 0 : i32
    %c0_i32_0 = arith.constant 0 : i32
    %c0_i32_1 = arith.constant 0 : i32
    return %c0_i32, %c0_i32_0 : i32, i32
  }
  func.func @transform_6(%arg0: i32) -> (i32, i32) {
    %c0_i32 = arith.constant 0 : i32
    %c0_i32_0 = arith.constant 0 : i32
    %c0_i32_1 = arith.constant 0 : i32
    return %c0_i32, %c0_i32_0 : i32, i32
  }
  func.func @transform_7(%arg0: i32) -> (i32, i32) {
    %c0_i32 = arith.constant 0 : i32
    %c0_i32_0 = arith.constant 0 : i32
    return %arg0, %c0_i32 : i32, i32
  }
}

</mosaic_0001>

<bundles_post_ra>
// kernel: attn_global_policy_v4.1
= control target key start
LH: loop header
LB: loop body
LE: loop exit
PB: predicated region body
PF: predicated region fallthrough
CT: control target
= control target key end

     0   :  { %v100_v0 = vmov 0   ;;  %vm58_vm1 = vcmask 261120   ;;  %vm84_vm4 = vcmask 7168   ;;  %s165_s1 = inlined_call_operand.vmem [shape: f32[8,1], index: 1, kind: input, shape index: {}]   ;;  %s166_s2 = inlined_call_operand.vmem [shape: f32[1,32], index: 2, kind: input, shape index: {}]   ;;  %s167_s3 = inlined_call_operand.vmem [shape: f32[1,32], index: 3, kind: input, shape index: {}]   ;;  %s168_s4 = inlined_call_operand.vmem [shape: f32[1,32], index: 4, kind: input, shape index: {}]   ;;  %s169_s5 = inlined_call_operand.vmem [shape: f32[1,32], index: 5, kind: input, shape index: {}]   ;;  %s170_s0 = inlined_call_operand.vmem [shape: f32[8,32], index: 0, kind: input, shape index: {}]   ;;  %s171_s6 = inlined_call_operand.<no memory space> [shape: f32[1,1], index: 6, kind: input, shape index: {}]   ;;  %s172_s7 = inlined_call_operand.vmem [shape: f32[8,1], index: 7, kind: output, shape index: {}]  }
   0x1   :  { %91 = vset.pattern.permute.xlu0 %v100_v0  ;;  %v27_v1 = vld [vmem:[%s165_s1] sm:$0xff]  ;;  %v63_v16 = vstv %s171_s6 }
   0x2   :  { %31 = vperm.xlu0 %91, %v27_v1   ;;  %v92_v2 = vld [vmem:[%s166_s2] ss:$0 sm:$0xff] }
   0x3   :  { %v93_v3 = vld [vmem:[%s167_s3] ss:$0 sm:$0xff] }
   0x4   :  { %v95_v6 = vld [vmem:[%s169_s5] ss:$0 sm:$0xff] }
   0x5   :  { %v46_v8 = vld [vmem:[%s170_s0] sm:$0xff] }
   0x6   :  { %v94_v9 = vld [vmem:[%s168_s4] ss:$0 sm:$0xff]  ;;  %v56_v11 = vmul.f32 %v95_v6, %v46_v8 }
  0x74   :  { %v32_v4 = vpop.permute.xlu0 %31 }
  0x75   :  { %v37_v5 = vmul.f32 %v92_v2, %v32_v4 }
  0x77   :  { %v42_v7 = vadd.f32 %v93_v3, %v37_v5 }
  0x79   :  { %vm43_vm0 = vcmp.ge.f32.partialorder %v42_v7, 0.0  ;;  %v44_v10 = vmul.f32 0.1, %v42_v7 }
  0x7b   :  { %v45_v12 = vsel %vm43_vm0, %v42_v7, %v44_v10 }
  0x7c   :  { %v51_v13 = vmul.f32 %v94_v9, %v45_v12 }
  0x7e   :  { %v57_v14 = vadd.f32 %v56_v11, %v51_v13 }
  0x80   :  { %v59_v15 = vsel %vm58_vm1, %v57_v14, 0.0 }
  0x81   :  { %60 = vadd.xlane.f32.xlu0 %v59_v15 }
  0xf4   :  { %v61_v17 = vpop.xlane.xlu0 %60 }
  0xf5   :  { %v64_v18 = vadd.f32 %v63_v16, %v61_v17 }
  0xf7   :  { %v65_v19 = vsub.f32 0.0, %v64_v18 }
  0xf9   :  { %v66_v20 = vmul.f32 1.442695, %v65_v19 }
  0xfb   :  { %96 = vpow2.f32 %v66_v20 }
 0x101   :  { %v97_v21 = vpop.eup %96 }
 0x102   :  { %v68_v22 = vadd.f32 1.0, %v97_v21 }
 0x104   :  { %98 = vrcp.f32 %v68_v22  ;;  %v80_v26 = vand.u32 2147483648, %v68_v22  ;;  %v78_v28 = vand.u32 2147483647, %v68_v22  ;;  %vm74_vm3 = vweird.f32 %v68_v22 }
 0x106   :  { %v81_v30 = vor.u32 1.1754944e-38, %v80_v26  ;;  %vm79_vm6 = vcmp.eq.f32.partialorder %v78_v28, 8.507059e+37 }
 0x10a   :  { %v99_v23 = vpop.eup %98 }
 0x10b   :  { %v70_v24 = vmul.f32 %v99_v23, %v68_v22  ;;  %vm75_vm2 = vweird.f32 %v99_v23 }
 0x10c   :  { %vm76_vm5 = vmor %vm74_vm3, %vm75_vm2 }
 0x10d   :  { %v71_v25 = vsub.f32 1.0, %v70_v24 }
 0x10f   :  { %v72_v27 = vmul.f32 %v99_v23, %v71_v25 }
 0x111   :  { %v73_v29 = vadd.f32 %v99_v23, %v72_v27 }
 0x113   :  { %v77_v31 = vsel %vm76_vm5, %v99_v23, %v73_v29 }
 0x114   :  { %v82_v32 = vsel %vm79_vm6, %v81_v30, %v77_v31 }
 0x115   :  { %85 = vst.msk [vmem:[%s172_s7] sm:$0xff] %vm84_vm4, %v82_v32 }

</bundles_post_ra>
